<compile_context>
chip_gen: v6e
topology: v6e:2x2x1
jax: 0.10.0
libtpu: 0.0.40
codegen_flags: <defaults>
</compile_context>

<pallas_src>
import functools

import jax
import jax.numpy as jnp
import numpy as np
from jax.experimental import pallas as pl
from jax.experimental.pallas import tpu as pltpu


def make_santa_kernel(filter_sizes, n_filters, seq_len, b_tile, vocab, emb_dim,
                      compute_dtype):
    """Fused embedding + all-branch conv + relu + masked maxpool + fc kernel."""
    max_fs = max(filter_sizes)
    n_branch = len(filter_sizes)
    n_feat = n_branch * n_filters
    bts = b_tile * seq_len                     # flattened (batch, time) rows / step

    def kernel(ids_ref, table_ref, wconv_ref, bconv_ref, wfc_ref, bfc_ref,
               out_ref):
        # ---- Embedding lookup as a one-hot matmul (runs on the MXU). --------
        # vocab (50 x 32 f32) is tiny and stays VMEM-resident; for a big vocab
        # this would be replaced by jnp.take on the VMEM table / a DMA gather.
        ids = ids_ref[...]                                          # [bts, 1] i32
        viota = jax.lax.broadcasted_iota(jnp.int32, (bts, vocab), 1)
        onehot = (viota == ids).astype(compute_dtype)               # [bts, V]
        emb = jnp.dot(onehot, table_ref[...].astype(compute_dtype),
                      preferred_element_type=jnp.float32)           # [bts, E] f32

        # ---- im2col: tap t at flat row r is emb[r + t] (wrap -> masked). ----
        # Sublane roll is XLU work; lane-concat builds [bts, max_fs*E] so all
        # taps of all branches collapse into ONE conv matmul with K = 128.
        taps = [emb if t == 0 else pltpu.roll(emb, bts - t, 0)
                for t in range(max_fs)]
        win = jnp.concatenate(taps, axis=1).astype(compute_dtype)   # [bts, max_fs*E]

        # ---- All conv branches in one matmul; f32 bias + ReLU epilogue. -----
        h = jnp.dot(win, wconv_ref[...].astype(compute_dtype),
                    preferred_element_type=jnp.float32)             # [bts, n_feat]
        h = jnp.maximum(h + bconv_ref[...], 0.0)                    # bias + ReLU
        h3 = h.reshape(b_tile, seq_len, n_feat)                     # [Bt, S, n_feat]

        # ---- Masked max-over-time per branch + FC as an accumulation. -------
        # Positions s >= S - fs + 1 used wrapped windows; mask them to 0 (ReLU
        # output is >= 0, so this cannot change the valid max).
        pos = jax.lax.broadcasted_iota(jnp.int32,
                                       (b_tile, seq_len, n_filters), 1)
        acc = None
        for j, fs in enumerate(filter_sizes):
            lo = j * n_filters
            hj = h3[:, :, lo:lo + n_filters]                        # [Bt, S, F]
            valid = pos < (seq_len - fs + 1)
            pooled = jnp.max(jnp.where(valid, hj, 0.0), axis=1)     # [Bt, F]
            contrib = jnp.dot(
                pooled.astype(compute_dtype),
                wfc_ref[lo:lo + n_filters, :].astype(compute_dtype),
                preferred_element_type=jnp.float32)                 # [Bt, O]
            acc = contrib if acc is None else acc + contrib
        # Dropout is identity in eval mode.
        out_ref[...] = (acc + bfc_ref[...]).astype(out_ref.dtype)

    return kernel


@functools.partial(
    jax.jit,
    static_argnames=("filter_sizes", "n_filters", "b_tile", "compute_dtype"))
def santa_forward(text, emb_table, conv_ws, conv_bs, w_fc, b_fc, *,
                  filter_sizes, n_filters, b_tile,
                  compute_dtype=jnp.float32):
    B, S = text.shape
    V, E = emb_table.shape
    O = w_fc.shape[1]
    max_fs = max(filter_sizes)
    n_feat = len(filter_sizes) * n_filters
    assert B % b_tile == 0, "batch must be divisible by b_tile"

    # Pack every conv branch into one [max_fs*E, n_feat] RHS (zero-pad the
    # shorter branches) and concat the per-branch biases -> one conv matmul.
    packed = []
    for fs, w in zip(filter_sizes, conv_ws):
        w2 = w.reshape(fs * E, n_filters)                    # row index = tap*E + e
        packed.append(jnp.pad(w2, ((0, (max_fs - fs) * E), (0, 0))))
    w_conv = jnp.concatenate(packed, axis=1)                 # [max_fs*E, n_feat]
    b_conv = jnp.concatenate(conv_bs, axis=1)                # [1, n_feat]

    ids2d = text.reshape(B * S, 1).astype(jnp.int32)         # flat (batch*time) rows

    kernel = make_santa_kernel(filter_sizes, n_filters, S, b_tile, V, E,
                               compute_dtype)
    rows = b_tile * S
    return pl.pallas_call(
        kernel,
        out_shape=jax.ShapeDtypeStruct((B, O), jnp.float32),
        grid=(B // b_tile,),
        in_specs=[
            pl.BlockSpec((rows, 1), lambda i: (i, 0)),         # token ids (per block)
            pl.BlockSpec((V, E), lambda i: (0, 0)),            # embedding table (resident)
            pl.BlockSpec((max_fs * E, n_feat), lambda i: (0, 0)),  # packed conv weights
            pl.BlockSpec((1, n_feat), lambda i: (0, 0)),       # packed conv bias
            pl.BlockSpec((n_feat, O), lambda i: (0, 0)),       # fc weight
            pl.BlockSpec((1, O), lambda i: (0, 0)),            # fc bias
        ],
        out_specs=pl.BlockSpec((b_tile, O), lambda i: (i, 0)),
        compiler_params=pltpu.CompilerParams(
            dimension_semantics=("parallel",)),                # v7x: 2 TCs
    )(ids2d, emb_table, w_conv, b_conv, w_fc, b_fc)


def santa_reference(text, emb_table, conv_ws, conv_bs, w_fc, b_fc, filter_sizes):
    """Pure-JAX reference matching the PyTorch forward."""
    emb = jnp.take(emb_table, text, axis=0)          # [B, S, E]
    S = emb.shape[1]
    pooled = []
    for fs, w, b in zip(filter_sizes, conv_ws, conv_bs):
        L = S - fs + 1
        acc = jnp.zeros((emb.shape[0], L, w.shape[-1]), jnp.float32)
        for i in range(fs):
            acc = acc + jnp.einsum('ble,ef->blf', emb[:, i:i + L, :], w[i])
        h = jax.nn.relu(acc + b[None, :, :])
        pooled.append(jnp.max(h, axis=1))
    cat = jnp.concatenate(pooled, axis=1)
    return cat @ w_fc + b_fc


if __name__ == "__main__":
    # Module hyper-parameters (small, consistent with the PyTorch ctor).
    vocab_size = 50
    embedding_dim = 32
    n_filters = 8
    filter_sizes = (2, 3, 4)
    output_dim = 4
    batch, seq_len = 16, 16        # batch picked so the batch grid has 2 steps
    b_tile = 8                     # B_TILE*S = 128 matmul rows per grid step

    key = jax.random.PRNGKey(0)
    n_keys = 2 + 2 * len(filter_sizes) + 2
    keys = jax.random.split(key, n_keys)

    text = jax.random.randint(keys[0], (batch, seq_len), 0, vocab_size,
                              dtype=jnp.int32)
    emb_table = 0.1 * jax.random.normal(
        keys[1], (vocab_size, embedding_dim), jnp.float32)

    conv_ws, conv_bs = [], []
    for i, fs in enumerate(filter_sizes):
        conv_ws.append(0.1 * jax.random.normal(
            keys[2 + 2 * i], (fs, embedding_dim, n_filters), jnp.float32))
        conv_bs.append(0.1 * jax.random.normal(
            keys[3 + 2 * i], (1, n_filters), jnp.float32))

    w_fc = 0.1 * jax.random.normal(
        keys[-2], (len(filter_sizes) * n_filters, output_dim), jnp.float32)
    b_fc = 0.1 * jax.random.normal(keys[-1], (1, output_dim), jnp.float32)

    ref = santa_reference(text, emb_table, conv_ws, conv_bs, w_fc, b_fc,
                          filter_sizes)
    ref = np.asarray(jax.block_until_ready(ref))

    # f32 matmul operands: matches the PyTorch forward numerics.
    # (Tolerance leaves headroom for MXU default-precision differences between
    #  the XLA reference and the Mosaic kernel.)
    out = santa_forward(text, emb_table, tuple(conv_ws), tuple(conv_bs),
                        w_fc, b_fc, filter_sizes=filter_sizes,
                        n_filters=n_filters, b_tile=b_tile,
                        compute_dtype=jnp.float32)
    out = np.asarray(jax.block_until_ready(out))
    assert out.shape == (batch, output_dim)
    np.testing.assert_allclose(out, ref, rtol=5e-3, atol=5e-3)

    # bf16 matmul operands (f32 accumulate / f32 epilogue): the preferred
    # v6e/v7x path; looser tolerance for bf16 operand rounding.
    out_bf16 = santa_forward(text, emb_table, tuple(conv_ws), tuple(conv_bs),
                             w_fc, b_fc, filter_sizes=filter_sizes,
                             n_filters=n_filters, b_tile=b_tile,
                             compute_dtype=jnp.bfloat16)
    out_bf16 = np.asarray(jax.block_until_ready(out_bf16))
    np.testing.assert_allclose(out_bf16, ref, rtol=3e-2, atol=3e-2)

    print("KERNEL_OK")
</pallas_src>

<mosaic_0001>
module attributes {stable_mosaic.version = 11 : i64} {
  func.func @kernel(%arg0: i32, %arg1: memref<128x1xi32, #tpu.memory_space<vmem>>, %arg2: memref<50x32xf32, #tpu.memory_space<vmem>>, %arg3: memref<128x24xf32, #tpu.memory_space<vmem>>, %arg4: memref<1x24xf32, #tpu.memory_space<vmem>>, %arg5: memref<24x4xf32, #tpu.memory_space<vmem>>, %arg6: memref<1x4xf32, #tpu.memory_space<vmem>>, %arg7: memref<8x4xf32, #tpu.memory_space<vmem>>) attributes {dimension_semantics = [#tpu.dimension_semantics<parallel>], iteration_bounds = array<i64: 2>, scalar_prefetch = 0 : i64, scratch_operands = 0 : i64, tpu.core_type = #tpu.core_type<tc>, window_params = [{transform_indices = @transform_0, window_bounds = array<i64: 128, 1>}, {pipeline_mode = #tpu.pipeline_mode<synchronous>, transform_indices = @transform_1, window_bounds = array<i64: 50, 32>}, {pipeline_mode = #tpu.pipeline_mode<synchronous>, transform_indices = @transform_2, window_bounds = array<i64: 128, 24>}, {pipeline_mode = #tpu.pipeline_mode<synchronous>, transform_indices = @transform_3, window_bounds = array<i64: 1, 24>}, {pipeline_mode = #tpu.pipeline_mode<synchronous>, transform_indices = @transform_4, window_bounds = array<i64: 24, 4>}, {pipeline_mode = #tpu.pipeline_mode<synchronous>, transform_indices = @transform_5, window_bounds = array<i64: 1, 4>}, {transform_indices = @transform_6, window_bounds = array<i64: 8, 4>}]} {
    %c0 = arith.constant 0 : index
    %c0_0 = arith.constant 0 : index
    %0 = vector.load %arg1[%c0, %c0_0] : memref<128x1xi32, #tpu.memory_space<vmem>>, vector<128x1xi32>
    %1 = tpu.iota {dimensions = array<i32: 1>} : vector<128x50xi32>
    %2 = vector.broadcast %0 : vector<128x1xi32> to vector<128x50xi32>
    %3 = arith.cmpi eq, %1, %2 : vector<128x50xi32>
    %4 = arith.extui %3 : vector<128x50xi1> to vector<128x50xi32>
    %5 = arith.sitofp %4 : vector<128x50xi32> to vector<128x50xf32>
    %c0_1 = arith.constant 0 : index
    %c0_2 = arith.constant 0 : index
    %6 = vector.load %arg2[%c0_1, %c0_2] : memref<50x32xf32, #tpu.memory_space<vmem>>, vector<50x32xf32>
    %cst = arith.constant dense<0.000000e+00> : vector<128x32xf32>
    %7 = tpu.matmul %5, %6, %cst {dimension_numbers = #tpu.dot_dimension_numbers<[1], [0], [0], [1], [0, 0, 1, 1], [], []>} : vector<128x50xf32>, vector<50x32xf32>, vector<128x32xf32> -> vector<128x32xf32>
    %c127_i32 = arith.constant 127 : i32
    %8 = tpu.dynamic_rotate %7 by %c127_i32 dim 0 : vector<128x32xf32>, i32 -> vector<128x32xf32>
    %c126_i32 = arith.constant 126 : i32
    %9 = tpu.dynamic_rotate %7 by %c126_i32 dim 0 : vector<128x32xf32>, i32 -> vector<128x32xf32>
    %c125_i32 = arith.constant 125 : i32
    %10 = tpu.dynamic_rotate %7 by %c125_i32 dim 0 : vector<128x32xf32>, i32 -> vector<128x32xf32>
    %11 = tpu.concatenate %7, %8, %9, %10 in 1 : vector<128x32xf32>, vector<128x32xf32>, vector<128x32xf32>, vector<128x32xf32> -> vector<128x128xf32>
    %c0_3 = arith.constant 0 : index
    %c0_4 = arith.constant 0 : index
    %12 = vector.load %arg3[%c0_3, %c0_4] : memref<128x24xf32, #tpu.memory_space<vmem>>, vector<128x24xf32>
    %cst_5 = arith.constant dense<0.000000e+00> : vector<128x24xf32>
    %13 = tpu.matmul %11, %12, %cst_5 {dimension_numbers = #tpu.dot_dimension_numbers<[1], [0], [0], [1], [0, 0, 1, 1], [], []>} : vector<128x128xf32>, vector<128x24xf32>, vector<128x24xf32> -> vector<128x24xf32>
    %c0_6 = arith.constant 0 : index
    %c0_7 = arith.constant 0 : index
    %14 = vector.load %arg4[%c0_6, %c0_7] : memref<1x24xf32, #tpu.memory_space<vmem>>, vector<1x24xf32>
    %15 = vector.broadcast %14 : vector<1x24xf32> to vector<128x24xf32>
    %16 = arith.addf %13, %15 : vector<128x24xf32>
    %cst_8 = arith.constant 0.000000e+00 : f32
    %17 = vector.broadcast %cst_8 : f32 to vector<128x24xf32>
    %18 = arith.maximumf %16, %17 : vector<128x24xf32>
    %19 = vector.shape_cast %18 : vector<128x24xf32> to vector<8x16x24xf32>
    %20 = tpu.iota {dimensions = array<i32: 1>} : vector<8x16x8xi32>
    %21 = vector.extract_strided_slice %19 {offsets = [0, 0, 0], sizes = [8, 16, 8], strides = [1, 1, 1]} : vector<8x16x24xf32> to vector<8x16x8xf32>
    %c15_i32 = arith.constant 15 : i32
    %22 = vector.broadcast %c15_i32 : i32 to vector<8x16x8xi32>
    %23 = arith.cmpi slt, %20, %22 : vector<8x16x8xi32>
    %cst_9 = arith.constant 0.000000e+00 : f32
    %24 = vector.broadcast %cst_9 : f32 to vector<8x16x8xf32>
    %25 = arith.select %23, %21, %24 : vector<8x16x8xi1>, vector<8x16x8xf32>
    %cst_10 = arith.constant dense<0xFF800000> : vector<8x8xf32>
    %26 = vector.multi_reduction <maximumf>, %25, %cst_10 [1] : vector<8x16x8xf32> to vector<8x8xf32>
    %c0_11 = arith.constant 0 : index
    %c0_12 = arith.constant 0 : index
    %27 = vector.load %arg5[%c0_11, %c0_12] : memref<24x4xf32, #tpu.memory_space<vmem>>, vector<8x4xf32>
    %cst_13 = arith.constant dense<0.000000e+00> : vector<8x4xf32>
    %28 = tpu.matmul %26, %27, %cst_13 {dimension_numbers = #tpu.dot_dimension_numbers<[1], [0], [0], [1], [0, 0, 1, 1], [], []>} : vector<8x8xf32>, vector<8x4xf32>, vector<8x4xf32> -> vector<8x4xf32>
    %29 = vector.extract_strided_slice %19 {offsets = [0, 0, 8], sizes = [8, 16, 8], strides = [1, 1, 1]} : vector<8x16x24xf32> to vector<8x16x8xf32>
    %c14_i32 = arith.constant 14 : i32
    %30 = vector.broadcast %c14_i32 : i32 to vector<8x16x8xi32>
    %31 = arith.cmpi slt, %20, %30 : vector<8x16x8xi32>
    %cst_14 = arith.constant 0.000000e+00 : f32
    %32 = vector.broadcast %cst_14 : f32 to vector<8x16x8xf32>
    %33 = arith.select %31, %29, %32 : vector<8x16x8xi1>, vector<8x16x8xf32>
    %cst_15 = arith.constant dense<0xFF800000> : vector<8x8xf32>
    %34 = vector.multi_reduction <maximumf>, %33, %cst_15 [1] : vector<8x16x8xf32> to vector<8x8xf32>
    %c8 = arith.constant 8 : index
    %c0_16 = arith.constant 0 : index
    %35 = vector.load %arg5[%c8, %c0_16] : memref<24x4xf32, #tpu.memory_space<vmem>>, vector<8x4xf32>
    %cst_17 = arith.constant dense<0.000000e+00> : vector<8x4xf32>
    %36 = tpu.matmul %34, %35, %cst_17 {dimension_numbers = #tpu.dot_dimension_numbers<[1], [0], [0], [1], [0, 0, 1, 1], [], []>} : vector<8x8xf32>, vector<8x4xf32>, vector<8x4xf32> -> vector<8x4xf32>
    %37 = arith.addf %28, %36 : vector<8x4xf32>
    %38 = vector.extract_strided_slice %19 {offsets = [0, 0, 16], sizes = [8, 16, 8], strides = [1, 1, 1]} : vector<8x16x24xf32> to vector<8x16x8xf32>
    %c13_i32 = arith.constant 13 : i32
    %39 = vector.broadcast %c13_i32 : i32 to vector<8x16x8xi32>
    %40 = arith.cmpi slt, %20, %39 : vector<8x16x8xi32>
    %cst_18 = arith.constant 0.000000e+00 : f32
    %41 = vector.broadcast %cst_18 : f32 to vector<8x16x8xf32>
    %42 = arith.select %40, %38, %41 : vector<8x16x8xi1>, vector<8x16x8xf32>
    %cst_19 = arith.constant dense<0xFF800000> : vector<8x8xf32>
    %43 = vector.multi_reduction <maximumf>, %42, %cst_19 [1] : vector<8x16x8xf32> to vector<8x8xf32>
    %c16 = arith.constant 16 : index
    %c0_20 = arith.constant 0 : index
    %44 = vector.load %arg5[%c16, %c0_20] : memref<24x4xf32, #tpu.memory_space<vmem>>, vector<8x4xf32>
    %cst_21 = arith.constant dense<0.000000e+00> : vector<8x4xf32>
    %45 = tpu.matmul %43, %44, %cst_21 {dimension_numbers = #tpu.dot_dimension_numbers<[1], [0], [0], [1], [0, 0, 1, 1], [], []>} : vector<8x8xf32>, vector<8x4xf32>, vector<8x4xf32> -> vector<8x4xf32>
    %46 = arith.addf %37, %45 : vector<8x4xf32>
    %c0_22 = arith.constant 0 : index
    %c0_23 = arith.constant 0 : index
    %47 = vector.load %arg6[%c0_22, %c0_23] : memref<1x4xf32, #tpu.memory_space<vmem>>, vector<1x4xf32>
    %48 = vector.broadcast %47 : vector<1x4xf32> to vector<8x4xf32>
    %49 = arith.addf %46, %48 : vector<8x4xf32>
    %c0_24 = arith.constant 0 : index
    %c0_25 = arith.constant 0 : index
    %50 = vector.load %arg7[%c0_24, %c0_25] : memref<8x4xf32, #tpu.memory_space<vmem>>, vector<8x4xf32>
    tpu.vector_store %arg7[%c0_24, %c0_25], %49 {strides = array<i32>} : memref<8x4xf32, #tpu.memory_space<vmem>>, vector<8x4xf32>,
    return
  }
  func.func @transform_0(%arg0: i32) -> (i32, i32) {
    %c0_i32 = arith.constant 0 : i32
    %c0_i32_0 = arith.constant 0 : i32
    return %arg0, %c0_i32 : i32, i32
  }
  func.func @transform_1(%arg0: i32) -> (i32, i32) {
    %c0_i32 = arith.constant 0 : i32
    %c0_i32_0 = arith.constant 0 : i32
    %c0_i32_1 = arith.constant 0 : i32
    return %c0_i32, %c0_i32_0 : i32, i32
  }
  func.func @transform_2(%arg0: i32) -> (i32, i32) {
    %c0_i32 = arith.constant 0 : i32
    %c0_i32_0 = arith.constant 0 : i32
    %c0_i32_1 = arith.constant 0 : i32
    return %c0_i32, %c0_i32_0 : i32, i32
  }
  func.func @transform_3(%arg0: i32) -> (i32, i32) {
    %c0_i32 = arith.constant 0 : i32
    %c0_i32_0 = arith.constant 0 : i32
    %c0_i32_1 = arith.constant 0 : i32
    return %c0_i32, %c0_i32_0 : i32, i32
  }
  func.func @transform_4(%arg0: i32) -> (i32, i32) {
    %c0_i32 = arith.constant 0 : i32
    %c0_i32_0 = arith.constant 0 : i32
    %c0_i32_1 = arith.constant 0 : i32
    return %c0_i32, %c0_i32_0 : i32, i32
  }
  func.func @transform_5(%arg0: i32) -> (i32, i32) {
    %c0_i32 = arith.constant 0 : i32
    %c0_i32_0 = arith.constant 0 : i32
    %c0_i32_1 = arith.constant 0 : i32
    return %c0_i32, %c0_i32_0 : i32, i32
  }
  func.func @transform_6(%arg0: i32) -> (i32, i32) {
    %c0_i32 = arith.constant 0 : i32
    %c0_i32_0 = arith.constant 0 : i32
    return %arg0, %c0_i32 : i32, i32
  }
}

</mosaic_0001>

<bundles_post_ra>
// kernel: santa_forward.1
= control target key start
LH: loop header
LB: loop body
LE: loop exit
PB: predicated region body
PF: predicated region fallthrough
CT: control target
= control target key end

     0   :  { %s2119_s21 = smov 0   ;;  %s2767_s0 = inlined_call_operand.vmem [shape: s32[256,1], index: 0, kind: input, shape index: {}]   ;;  %s2768_s1 = inlined_call_operand.vmem [shape: f32[50,32], index: 1, kind: input, shape index: {}]   ;;  %s2769_s2 = inlined_call_operand.vmem [shape: f32[128,24], index: 2, kind: input, shape index: {}]   ;;  %s2770_s3 = inlined_call_operand.vmem [shape: f32[1,24], index: 3, kind: input, shape index: {}]   ;;  %s2771_s4 = inlined_call_operand.vmem [shape: f32[24,4], index: 4, kind: input, shape index: {}]   ;;  %s2772_s5 = inlined_call_operand.vmem [shape: f32[1,4], index: 5, kind: input, shape index: {}]   ;;  %s2773_s6 = inlined_call_operand.vmem [shape: f32[16,4], index: 6, kind: output, shape index: {}]  }
   0x1 LB: > { %s2125_s22 = sadd.s32 4294967295, %s2074_s21   ;;  %p1716_p0 = scmp.ge.s32.totalorder %s2074_s21, 1  ;;  %s2074_s21 = sphi %s2119_s21, %s16_s21  }
   0x2   : > { %p213_p1 = scmp.lt.s32.totalorder %s2074_s21, 3 }
   0x4   : > { %p214_p2 = pnand %p1716_p0, %p213_p1 }
   0x5   : > { %s1717_s23 = sshll.u32 (!%p214_p2), %s2125_s22, 4  ;;  %s2079_s7 = smov (!%p214_p2), 32  }
   0x6   : > { %217 = sbr.rel (%p214_p2) target bundleno = 1066 (0x42a), region = 44  ;;  %p243_p3 = scmp.lt.s32.totalorder (!%p214_p2), %s1717_s23, 31 }
   0x7   : > { %s2080_s8 = smov (!%p214_p2), 96   ;;  %s2082_s13 = smov (!%p214_p2), 112  }
   0x8   : > { %s2083_s14 = smov (!%p214_p2), 120   ;;  %p248_p4 = scmp.lt.s32.totalorder (!%p214_p2), %s2125_s22, 1 }
   0xb   : > { %v372_v0 = vld [vmem:[%s2768_s1 + $0x30] sm:$0x3]  ;;  %vm422_vm0 = vcmask 1041408   ;;  %v2076_v1 = vmov 0   ;;  %v371_v2 = vld [vmem:[%s2768_s1 + $0x28] sm:$0xff]  ;;  %s2775_s23 = smov (!%p243_p3, %s1717_s23), 31  ;;  %v268_v25 = vlaneseq }
   0xc   : > { %1947 = vset.pattern.permute.xlu1 %v2076_v1  ;;  %1946 = vset.pattern.permute.xlu0 %v2076_v1  ;;  %v370_v3 = vld [vmem:[%s2768_s1 + $0x20] sm:$0xff]  ;;  %s1718_s30 = sshll.u32 %s2775_s23, 3  ;;  %v369_v4 = vld [vmem:[%s2768_s1 + $0x18] sm:$0xff]  ;;  %v368_v7 = vld [vmem:[%s2768_s1 + $0x10] sm:$0xff]  ;;  %v2077_v16 = vmov 0.0   ;;  %vm373_vm1 = vcmask 408576  }
   0xd   : > { %1821 = vmatprep.subr.msk.mxu0 %vm422_vm0, %v372_v0  ;;  %s2142_s9 = scalar_lea.vmem %s2767_s0, %s1718_s30  ;;  %v367_v10 = vld [vmem:[%s2768_s1 + $0x8] sm:$0xff]  ;;  %v366_v13 = vld [vmem:[%s2768_s1] sm:$0xff]  ;;  %v2174_v26 = vand.u32 127, %v268_v25  ;;  %v930_v59 = vld [vmem:[%s2769_s2 + $0x78] sm:$0xff]  ;;  %s2078_s30 = smov 64  }
   0xe   : > { %1822 = vmatpush3.msk.msra.mxu0 %vm422_vm0, %v372_v0  ;;  %v254_v5 = vld [vmem:[%s2142_s9 + $0x10] sm:$0xff]  ;;  %v252_v6 = vld [vmem:[%s2142_s9] sm:$0xff]  ;;  %v255_v8 = vld [vmem:[%s2142_s9 + $0x18] sm:$0xff]  ;;  %1859 = vmatprep.subr.mxu1 %v930_v59  ;;  %s2777_s22 = smov (!%p248_p4, %s2125_s22), 1 }
   0xf   : > { %1823 = vmatprep.subr.mxu0 %v371_v2  ;;  %277 = vperm.xlu1 %1947, %v254_v5   ;;  %v253_v9 = vld [vmem:[%s2142_s9 + $0x8] sm:$0xff]  ;;  %v256_v12 = vld [vmem:[%s2142_s9 + $0x20] sm:$0xff]  ;;  %v259_v14 = vld [vmem:[%s2142_s9 + $0x38] sm:$0xff]  ;;  %s1719_s19 = sshll.u32 %s2777_s22, 3 }
  0x10   : > { %1824 = vmatpush3.msra.mxu0 %v371_v2  ;;  %271 = vperm.xlu0 %1946, %v252_v6   ;;  %v257_v11 = vld [vmem:[%s2142_s9 + $0x28] sm:$0xff]  ;;  %v258_v15 = vld [vmem:[%s2142_s9 + $0x30] sm:$0xff]  ;;  %v260_v18 = vld [vmem:[%s2142_s9 + $0x40] sm:$0xff]  ;;  %s251_s26 = scalar_lea.vmem %s2773_s6, %s1719_s19 }
  0x11   : > { %1825 = vmatprep.subr.mxu0 %v370_v3  ;;  %v261_v17 = vld [vmem:[%s2142_s9 + $0x48] sm:$0xff]  ;;  %v263_v19 = vld [vmem:[%s2142_s9 + $0x58] sm:$0xff]  ;;  %v262_v20 = vld [vmem:[%s2142_s9 + $0x50] sm:$0xff]  ;;  %1860 = vmatpush3.msra.mxu1 %v930_v59 }
  0x12   : > { %1826 = vmatpush3.msra.mxu0 %v370_v3  ;;  %v265_v21 = vld [vmem:[%s2142_s9 + $0x68] sm:$0xff]  ;;  %v264_v22 = vld [vmem:[%s2142_s9 + $0x60] sm:$0xff]  ;;  %v267_v23 = vld [vmem:[%s2142_s9 + $0x78] sm:$0xff] }
  0x13   : > { %1827 = vmatprep.subr.mxu0 %v369_v4  ;;  %280 = vperm.xlu1 %1947, %v255_v8   ;;  %v266_v24 = vld [vmem:[%s2142_s9 + $0x70] sm:$0xff]  ;;  %v928_v61 = vld [vmem:[%s2769_s2 + $0x68] sm:$0xff]  ;;  %v927_v62 = vld [vmem:[%s2769_s2 + $0x60] sm:$0xff] }
  0x14   : > { %1828 = vmatpush3.msra.mxu0 %v369_v4  ;;  %274 = vperm.xlu0 %1946, %v253_v9   ;;  %v929_v60 = vld [vmem:[%s2769_s2 + $0x70] sm:$0xff]  ;;  %v926_v63 = vld [vmem:[%s2769_s2 + $0x58] sm:$0xff]  ;;  %v924_v1 = vld [vmem:[%s2769_s2 + $0x48] sm:$0xff] }
  0x15   : > { %1829 = vmatprep.subr.mxu0 %v368_v7  ;;  %1861 = vmatprep.subr.mxu1 %v929_v60  ;;  %v925_v0 = vld [vmem:[%s2769_s2 + $0x50] sm:$0xff]  ;;  %v923_v2 = vld [vmem:[%s2769_s2 + $0x40] sm:$0xff]  ;;  %v922_v3 = vld [vmem:[%s2769_s2 + $0x38] sm:$0xff] }
  0x16   : > { %1830 = vmatpush3.msra.mxu0 %v368_v7  ;;  %1862 = vmatpush3.msra.mxu1 %v929_v60  ;;  %v921_v4 = vld [vmem:[%s2769_s2 + $0x30] sm:$0xff]  ;;  %v920_v5 = vld [vmem:[%s2769_s2 + $0x28] sm:$0xff]  ;;  %v919_v6 = vld [vmem:[%s2769_s2 + $0x20] sm:$0xff] }
  0x17   : > { %1831 = vmatprep.subr.mxu0 %v367_v10  ;;  %286 = vperm.xlu1 %1947, %v257_v11   ;;  %v918_v8 = vld [vmem:[%s2769_s2 + $0x18] sm:$0xff]  ;;  %v917_v9 = vld [vmem:[%s2769_s2 + $0x10] sm:$0xff]  ;;  %v2271_v11 = vshrl.u32 %v268_v25, 7 }
  0x18   : > { %1832 = vmatpush3.msra.mxu0 %v367_v10  ;;  %283 = vperm.xlu0 %1946, %v256_v12  }
  0x19   : > { %1833 = vmatprep.subr.mxu0 %v366_v13  ;;  %1863 = vmatprep.subr.mxu1 %v928_v61 }
  0x1a   : > { %1834 = vmatpush3.msra.mxu0 %v366_v13  ;;  %1864 = vmatpush3.msra.mxu1 %v928_v61  ;;  %v916_v13 = vld [vmem:[%s2769_s2 + $0x8] sm:$0xff] }
  0x1b   : > { %1915 = vmatprep.subr.mxu0 %v2077_v16  ;;  %292 = vperm.xlu1 %1947, %v259_v14   ;;  %v915_v14 = vld [vmem:[%s2769_s2] sm:$0xff] }
  0x1c   : > { %289 = vperm.xlu0 %1946, %v258_v15   ;;  %1865 = vmatprep.subr.mxu1 %v927_v62 }
  0x1d   : > { %1866 = vmatpush3.msra.mxu1 %v927_v62 }
  0x1e   : > { %1867 = vmatprep.subr.mxu1 %v926_v63 }
  0x1f   : > { %298 = vperm.xlu1 %1947, %v261_v17   ;;  %1868 = vmatpush3.msra.mxu1 %v926_v63 }
  0x20   : > { %295 = vperm.xlu0 %1946, %v260_v18   ;;  %1869 = vmatprep.subr.mxu1 %v925_v0 }
  0x21   : > { %1870 = vmatpush3.msra.mxu1 %v925_v0 }
  0x22   : > { %1871 = vmatprep.subr.mxu1 %v924_v1 }
  0x23   : > { %304 = vperm.xlu1 %1947, %v263_v19   ;;  %1872 = vmatpush3.msra.mxu1 %v924_v1 }
  0x24   : > { %301 = vperm.xlu0 %1946, %v262_v20   ;;  %1873 = vmatprep.subr.mxu1 %v923_v2 }
  0x25   : > { %1874 = vmatpush3.msra.mxu1 %v923_v2 }
  0x26   : > { %1875 = vmatprep.subr.mxu1 %v922_v3 }
  0x27   : > { %310 = vperm.xlu1 %1947, %v265_v21   ;;  %1876 = vmatpush3.msra.mxu1 %v922_v3 }
  0x28   : > { %307 = vperm.xlu0 %1946, %v264_v22   ;;  %1877 = vmatprep.subr.mxu1 %v921_v4 }
  0x29   : > { %1878 = vmatpush3.msra.mxu1 %v921_v4 }
  0x2a   : > { %1879 = vmatprep.subr.mxu1 %v920_v5 }
  0x2b   : > { %316 = vperm.xlu1 %1947, %v267_v23   ;;  %1880 = vmatpush3.msra.mxu1 %v920_v5 }
  0x2c   : > { %313 = vperm.xlu0 %1946, %v266_v24   ;;  %1881 = vmatprep.subr.mxu1 %v919_v6 }
  0x2d   : > { %1882 = vmatpush3.msra.mxu1 %v919_v6 }
  0x2e   : > { %1883 = vmatprep.subr.mxu1 %v918_v8 }
  0x2f   : > { %1884 = vmatpush3.msra.mxu1 %v918_v8 }
  0x30   : > { %1885 = vmatprep.subr.mxu1 %v917_v9 }
  0x31   : > { %1886 = vmatpush3.msra.mxu1 %v917_v9 }
  0x32   : > { %1887 = vmatprep.subr.mxu1 %v916_v13 }
  0x33   : > { %1888 = vmatpush3.msra.mxu1 %v916_v13 }
  0x34   : > { %1889 = vmatprep.subr.mxu1 %v915_v14 }
  0x35   : > { %1890 = vmatpush3.msra.mxu1 %v915_v14 }
  0x8a   : > { %v278_v27 = vpop.permute.xlu1 %277 }
  0x8b   : > { %v272_v28 = vpop.permute.xlu0 %271  ;;  %vm320_vm3 = vcmp.eq.s32.totalorder %v2174_v26, %v278_v27 }
  0x8c   : > { %vm318_vm2 = vcmp.eq.s32.totalorder %v2174_v26, %v272_v28  ;;  %v1722_v32 = vsel %vm320_vm3, 1.0, %v2077_v16  ;;  %vm589_vm3 = vcmp.lt.s32.totalorder %v2271_v11, 7 }
  0x8d   : > { %v1720_v29 = vsel %vm318_vm2, 1.0, %v2077_v16 }
  0x8e   : > { %1835 = vmatprep.mubr.msk.f32.mxu0 %vm373_vm1, %v1720_v29  ;;  %v281_v30 = vpop.permute.xlu1 %280 }
  0x8f   : > { %v275_v31 = vpop.permute.xlu0 %274  ;;  %vm321_vm5 = vcmp.eq.s32.totalorder %v2174_v26, %v281_v30 }
  0x90   : > { %vm319_vm4 = vcmp.eq.s32.totalorder %v2174_v26, %v275_v31  ;;  %v1723_v36 = vsel %vm321_vm5, 1.0, %v2077_v16  ;;  %vm864_vm5 = vcmask 261120  }
  0x91   : > { %v1721_v33 = vsel %vm319_vm4, 1.0, %v2077_v16  ;;  %vm655_vm4 = vcmp.lt.s32.totalorder %v2271_v11, 5 }
  0x92   : > { %1836 = vmatmul.mubr.msk.f32.vlgmr.msra.gmra.mxu0 %vm373_vm1, %v1721_v33  ;;  %v287_v34 = vpop.permute.xlu1 %286 }
  0x93   : > { %1838 = vmatprep.mubr.msk.f32.mxu0 %vm373_vm1, %v1722_v32  ;;  %v284_v35 = vpop.permute.xlu0 %283  ;;  %vm323_vm7 = vcmp.eq.s32.totalorder %v2174_v26, %v287_v34 }
  0x94   : > { %vm322_vm6 = vcmp.eq.s32.totalorder %v2174_v26, %v284_v35  ;;  %v1725_v40 = vsel %vm323_vm7, 1.0, %v2077_v16  ;;  %vm898_vm7 = vcmask 785408  }
  0x95   : > { %v1724_v37 = vsel %vm322_vm6, 1.0, %v2077_v16  ;;  %vm881_vm6 = vcmask 523264  }
  0x96   : > { %1839 = vmatmul.mubr.msk.f32.gmra.mxu0 %vm373_vm1, %v1723_v36  ;;  %v293_v38 = vpop.permute.xlu1 %292 }
  0x97   : > { %1841 = vmatprep.mubr.msk.f32.mxu0 %vm373_vm1, %v1724_v37  ;;  %v290_v39 = vpop.permute.xlu0 %289  ;;  %vm325_vm9 = vcmp.eq.s32.totalorder %v2174_v26, %v293_v38 }
  0x98   : > { %vm324_vm8 = vcmp.eq.s32.totalorder %v2174_v26, %v290_v39  ;;  %v1727_v44 = vsel %vm325_vm9, 1.0, %v2077_v16 }
  0x99   : > { %v1726_v41 = vsel %vm324_vm8, 1.0, %v2077_v16  ;;  %vm2081_vm8 = vmmov 0  }
  0x9a   : > { %1842 = vmatmul.mubr.msk.f32.gmra.mxu0 %vm373_vm1, %v1725_v40  ;;  %v299_v42 = vpop.permute.xlu1 %298 }
  0x9b   : > { %1844 = vmatprep.mubr.msk.f32.mxu0 %vm373_vm1, %v1726_v41  ;;  %v296_v43 = vpop.permute.xlu0 %295  ;;  %vm327_vm11 = vcmp.eq.s32.totalorder %v2174_v26, %v299_v42 }
  0x9c   : > { %vm326_vm10 = vcmp.eq.s32.totalorder %v2174_v26, %v296_v43  ;;  %v1729_v48 = vsel %vm327_vm11, 1.0, %v2077_v16 }
  0x9d   : > { %v1728_v45 = vsel %vm326_vm10, 1.0, %v2077_v16  ;;  %vm1118_vm10 = vcmask 64512  }
  0x9e   : > { %1845 = vmatmul.mubr.msk.f32.gmra.mxu0 %vm373_vm1, %v1727_v44  ;;  %v305_v46 = vpop.permute.xlu1 %304 }
  0x9f   : > { %1847 = vmatprep.mubr.msk.f32.mxu0 %vm373_vm1, %v1728_v45  ;;  %v302_v47 = vpop.permute.xlu0 %301  ;;  %vm329_vm13 = vcmp.eq.s32.totalorder %v2174_v26, %v305_v46 }
  0xa0   : > { %vm328_vm12 = vcmp.eq.s32.totalorder %v2174_v26, %v302_v47  ;;  %v1731_v52 = vsel %vm329_vm13, 1.0, %v2077_v16  ;;  %vm1210_vm13 = vcmask 130112  }
  0xa1   : > { %v1730_v49 = vsel %vm328_vm12, 1.0, %v2077_v16 }
  0xa2   : > { %1848 = vmatmul.mubr.msk.f32.gmra.mxu0 %vm373_vm1, %v1729_v48  ;;  %v311_v50 = vpop.permute.xlu1 %310 }
  0xa3   : > { %1850 = vmatprep.mubr.msk.f32.mxu0 %vm373_vm1, %v1730_v49  ;;  %v308_v51 = vpop.permute.xlu0 %307  ;;  %vm331_vm15 = vcmp.eq.s32.totalorder %v2174_v26, %v311_v50 }
  0xa4   : > { %vm330_vm14 = vcmp.eq.s32.totalorder %v2174_v26, %v308_v51  ;;  %v1733_v56 = vsel %vm331_vm15, 1.0, %v2077_v16  ;;  %vm1292_vm15 = vcmask 1041409  }
  0xa5   : > { %v1732_v53 = vsel %vm330_vm14, 1.0, %v2077_v16  ;;  %vm1485_vm14 = vcmask 195712  }
  0xa6   : > { %1851 = vmatmul.mubr.msk.f32.gmra.mxu0 %vm373_vm1, %v1731_v52  ;;  %v317_v54 = vpop.permute.xlu1 %316 }
  0xa7   : > { %1853 = vmatprep.mubr.msk.f32.mxu0 %vm373_vm1, %v1732_v53  ;;  %v314_v55 = vpop.permute.xlu0 %313  ;;  %vm333_vm2 = vcmp.eq.s32.totalorder %v2174_v26, %v317_v54 }
  0xa8   : > { %vm332_vm0 = vcmp.eq.s32.totalorder %v2174_v26, %v314_v55  ;;  %v1735_v58 = vsel %vm333_vm2, 1.0, %v2077_v16  ;;  %vm1296_vm2 = vcmask 1043459  }
  0xa9   : > { %v1734_v57 = vsel %vm332_vm0, 1.0, %v2077_v16  ;;  %vm1294_vm0 = vcmask 1042434  }
  0xaa   : > { %1854 = vmatmul.mubr.msk.f32.gmra.mxu0 %vm373_vm1, %v1733_v56 }
  0xab   : > { %1856 = vmatprep.mubr.msk.f32.mxu0 %vm373_vm1, %v1734_v57 }
  0xae   : > { %1857 = vmatmul.mubr.msk.f32.gmra.mxu0 %vm373_vm1, %v1735_v58  ;;  %vm622_vm1 = vcmp.lt.s32.totalorder %v2271_v11, 6 }
  0xaf   : > { %1917 = vmatprep.mubr.msk.f32.mxu0 %vm2081_vm8, %v2077_v16 }
 0x152   : > { %v2260_v7 = vpop.f32.mrf.mxu0 }
 0x153   : > { %v607_v19 = vrot.slane %v2260_v7, 2  ;;  %v572_v22 = vrot.slane %v2260_v7, 1  ;;  %v640_v25 = vrot.slane %v2260_v7, 3 }
 0x154   : > { %v2268_v10 = vpop.f32.mrf.mxu0 }
 0x155   : > { %v606_v15 = vrot.slane %v2268_v10, 2  ;;  %v571_v17 = vrot.slane %v2268_v10, 1  ;;  %v639_v28 = vrot.slane %v2268_v10, 3 }
 0x156   : > { %v2273_v12 = vpop.f32.mrf.mxu0 }
 0x157   : > { %v637_v27 = vsel %vm622_vm1, %v606_v15, %v607_v19  ;;  %v604_v32 = vsel %vm589_vm3, %v571_v17, %v572_v22  ;;  %v574_v33 = vrot.slane %v2273_v12, 1  ;;  %v642_v40 = vrot.slane %v2273_v12, 3 }
 0x158   : > { %v2283_v18 = vpop.f32.mrf.mxu0  ;;  %v609_v43 = vrot.slane %v2273_v12, 2  ;;  %v670_v45 = vsel %vm655_vm4, %v639_v28, %v640_v25 }
 0x159   : > { %v573_v20 = vrot.slane %v2283_v18, 1  ;;  %v608_v21 = vrot.slane %v2283_v18, 2  ;;  %v641_v23 = vrot.slane %v2283_v18, 3 }
 0x15a   : > { %v2292_v24 = vpop.f32.mrf.mxu0 }
 0x15b   : > { %v636_v26 = vsel %vm622_vm1, %v607_v19, %v608_v21  ;;  %v603_v31 = vsel %vm589_vm3, %v572_v22, %v573_v20  ;;  %v669_v39 = vsel %vm655_vm4, %v640_v25, %v641_v23  ;;  %v602_v42 = vsel %vm589_vm3, %v573_v20, %v574_v33 }
 0x15c   : > { %v2303_v29 = vpop.f32.mrf.mxu0  ;;  %v1953_v30 = vpack.i.bf16 %v636_v26, %v637_v27  ;;  %v1948_v36 = vpack.i.bf16 %v603_v31, %v604_v32  ;;  %v1958_v48 = vpack.i.bf16 %v669_v39, %v670_v45  ;;  %v611_v53 = vrot.slane %v2292_v24, 2 }
 0x15d   : > { %v575_v34 = vrot.slane %v2303_v29, 1  ;;  %v643_v35 = vrot.slane %v2303_v29, 3  ;;  %v610_v37 = vrot.slane %v2303_v29, 2  ;;  %v668_v54 = vsel %vm655_vm4, %v641_v23, %v642_v40 }
 0x15e   : > { %1954 = vrot.lane.b32.xlu1 %v1953_v30, %s2078_s30  ;;  %v2316_v38 = vpop.f32.mrf.mxu0  ;;  %1949 = vrot.lane.b32.xlu0 %v1948_v36, %s2079_s7  ;;  %v576_v55 = vrot.slane %v2292_v24, 1  ;;  %v635_v57 = vsel %vm622_vm1, %v608_v21, %v609_v43  ;;  %v644_v3 = vrot.slane %v2292_v24, 3 }
 0x15f   : > { %v601_v41 = vsel %vm589_vm3, %v574_v33, %v575_v34  ;;  %v667_v49 = vsel %vm655_vm4, %v642_v40, %v643_v35  ;;  %v634_v52 = vsel %vm622_vm1, %v609_v43, %v610_v37  ;;  %v578_v1 = vrot.slane %v2316_v38, 1 }
 0x160   : > { %v2327_v44 = vpop.f32.mrf.mxu0  ;;  %v1963_v46 = vpack.i.bf16 %v601_v41, %v602_v42  ;;  %v1973_v58 = vpack.i.bf16 %v667_v49, %v668_v54  ;;  %v1968_v60 = vpack.i.bf16 %v634_v52, %v635_v57  ;;  %v633_v2 = vsel %vm622_vm1, %v610_v37, %v611_v53 }
 0x161   : > { %v612_v47 = vrot.slane %v2327_v44, 2  ;;  %v577_v50 = vrot.slane %v2327_v44, 1  ;;  %v645_v62 = vrot.slane %v2327_v44, 3  ;;  %v600_v6 = vsel %vm589_vm3, %v575_v34, %v576_v55 }
 0x162   : > { %1964 = vrot.lane.b32.xlu1 %v1963_v46, %s2079_s7  ;;  %v2338_v51 = vpop.f32.mrf.mxu0  ;;  %1959 = vrot.lane.b32.xlu0 %v1958_v48, %s2080_s8  ;;  %v646_v21 = vrot.slane %v2316_v38, 3  ;;  %v613_v23 = vrot.slane %v2316_v38, 2  ;;  %v666_v25 = vsel %vm655_vm4, %v643_v35, %v644_v3 }
 0x163   : > { %v632_v61 = vsel %vm622_vm1, %v611_v53, %v612_v47  ;;  %v599_v0 = vsel %vm589_vm3, %v576_v55, %v577_v50  ;;  %v665_v20 = vsel %vm655_vm4, %v644_v3, %v645_v62  ;;  %v598_v22 = vsel %vm589_vm3, %v577_v50, %v578_v1 }
 0x164   : > { %v2347_v56 = vpop.f32.mrf.mxu0  ;;  %v1983_v5 = vpack.i.bf16 %v632_v61, %v633_v2  ;;  %v1978_v9 = vpack.i.bf16 %v599_v0, %v600_v6  ;;  %v1988_v30 = vpack.i.bf16 %v665_v20, %v666_v25  ;;  %v615_v36 = vrot.slane %v2338_v51, 2 }
 0x165   : > { %v579_v59 = vrot.slane %v2347_v56, 1  ;;  %v647_v8 = vrot.slane %v2347_v56, 3  ;;  %v614_v14 = vrot.slane %v2347_v56, 2  ;;  %v664_v35 = vsel %vm655_vm4, %v645_v62, %v646_v21 }
 0x166   : > { %1974 = vrot.lane.b32.xlu1 %v1973_v58, %s2080_s8  ;;  %v2356_v63 = vpop.f32.mrf.mxu0  ;;  %1969 = vrot.lane.b32.xlu0 %v1968_v60, %s2078_s30  ;;  %v580_v37 = vrot.slane %v2338_v51, 1  ;;  %v631_v39 = vsel %vm622_vm1, %v612_v47, %v613_v23  ;;  %v648_v50 = vrot.slane %v2338_v51, 3 }
 0x167   : > { %v597_v13 = vsel %vm589_vm3, %v578_v1, %v579_v59  ;;  %v663_v31 = vsel %vm655_vm4, %v646_v21, %v647_v8  ;;  %v630_v34 = vsel %vm622_vm1, %v613_v23, %v614_v14  ;;  %v582_v49 = vrot.slane %v2356_v63, 1 }
 0x168   : > { %v2365_v4 = vpop.f32.mrf.mxu0  ;;  %v1993_v26 = vpack.i.bf16 %v597_v13, %v598_v22  ;;  %v2003_v40 = vpack.i.bf16 %v663_v31, %v664_v35  ;;  %v1998_v42 = vpack.i.bf16 %v630_v34, %v631_v39  ;;  %v629_v47 = vsel %vm622_vm1, %v614_v14, %v615_v36 }
 0x169   : > { %v616_v27 = vrot.slane %v2365_v4, 2  ;;  %v581_v32 = vrot.slane %v2365_v4, 1  ;;  %v649_v45 = vrot.slane %v2365_v4, 3  ;;  %v596_v53 = vsel %vm589_vm3, %v579_v59, %v580_v37 }
 0x16a   : > { %1984 = vrot.lane.b32.xlu1 %v1983_v5, %s2078_s30  ;;  %v2374_v19 = vpop.f32.mrf.mxu0  ;;  %1979 = vrot.lane.b32.xlu0 %v1978_v9, %s2079_s7  ;;  %v650_v62 = vrot.slane %v2356_v63, 3  ;;  %v617_v0 = vrot.slane %v2356_v63, 2  ;;  %v662_v1 = vsel %vm655_vm4, %v647_v8, %v648_v50 }
 0x16b   : > { %v628_v43 = vsel %vm622_vm1, %v615_v36, %v616_v27  ;;  %v595_v48 = vsel %vm589_vm3, %v580_v37, %v581_v32  ;;  %v661_v61 = vsel %vm655_vm4, %v648_v50, %v649_v45  ;;  %v594_v59 = vsel %vm589_vm3, %v581_v32, %v582_v49 }
 0x16c   : > { %v2389_v33 = vpop.f32.mrf.mxu0  ;;  %v2013_v52 = vpack.i.bf16 %v628_v43, %v629_v47  ;;  %v2008_v55 = vpack.i.bf16 %v595_v48, %v596_v53  ;;  %v2018_v5 = vpack.i.bf16 %v661_v61, %v662_v1  ;;  %v619_v14 = vrot.slane %v2374_v19, 2 }
 0x16d   : > { %v583_v41 = vrot.slane %v2389_v33, 1  ;;  %v651_v54 = vrot.slane %v2389_v33, 3  ;;  %v618_v58 = vrot.slane %v2389_v33, 2  ;;  %v660_v8 = vsel %vm655_vm4, %v649_v45, %v650_v62 }
 0x16e   : > { %1994 = vrot.lane.b32.xlu1 %v1993_v26, %s2079_s7  ;;  %1989 = vrot.lane.b32.xlu0 %v1988_v30, %s2080_s8  ;;  %v2405_v46 = vpop.f32.mrf.mxu0  ;;  %v584_v20 = vrot.slane %v2374_v19, 1  ;;  %v627_v21 = vsel %vm622_vm1, %v616_v27, %v617_v0  ;;  %v652_v27 = vrot.slane %v2374_v19, 3 }
 0x16f   : > { %v593_v57 = vsel %vm589_vm3, %v582_v49, %v583_v41  ;;  %v659_v6 = vsel %vm655_vm4, %v650_v62, %v651_v54  ;;  %v626_v13 = vsel %vm622_vm1, %v617_v0, %v618_v58  ;;  %v586_v31 = vrot.slane %v2405_v46, 1 }
 0x170   : > { %v2421_v60 = vpop.f32.mrf.mxu0  ;;  %v2023_v2 = vpack.i.bf16 %v593_v57, %v594_v59  ;;  %v2033_v22 = vpack.i.bf16 %v659_v6, %v660_v8  ;;  %v2028_v23 = vpack.i.bf16 %v626_v13, %v627_v21  ;;  %v625_v32 = vsel %vm622_vm1, %v618_v58, %v619_v14 }
 0x171   : > { %v620_v3 = vrot.slane %v2421_v60, 2  ;;  %v585_v9 = vrot.slane %v2421_v60, 1  ;;  %v653_v26 = vrot.slane %v2421_v60, 3  ;;  %v592_v36 = vsel %vm589_vm3, %v583_v41, %v584_v20 }
 0x172   : > { %2004 = vrot.lane.b32.xlu1 %v2003_v40, %s2080_s8  ;;  %1999 = vrot.lane.b32.xlu0 %v1998_v42, %s2078_s30  ;;  %v654_v40 = vrot.slane %v2405_v46, 3  ;;  %v605_v42 = vsel %vm589_vm3, %v586_v31, %v571_v17  ;;  %v621_v41 = vrot.slane %v2405_v46, 2  ;;  %v658_v43 = vsel %vm655_vm4, %v651_v54, %v652_v27 }
 0x173   : > { %v624_v25 = vsel %vm622_vm1, %v619_v14, %v620_v3  ;;  %v591_v30 = vsel %vm589_vm3, %v584_v20, %v585_v9  ;;  %v590_v37 = vsel %vm589_vm3, %v585_v9, %v586_v31  ;;  %v657_v39 = vsel %vm655_vm4, %v652_v27, %v653_v26 }
 0x174   : > { %v2043_v34 = vpack.i.bf16 %v624_v25, %v625_v32  ;;  %v2038_v35 = vpack.i.bf16 %v591_v30, %v592_v36  ;;  %v2053_v45 = vpack.i.bf16 %v605_v42, %v590_v37  ;;  %v2048_v48 = vpack.i.bf16 %v657_v39, %v658_v43 }
 0x175   : > { %v656_v49 = vsel %vm655_vm4, %v653_v26, %v654_v40  ;;  %v623_v47 = vsel %vm622_vm1, %v620_v3, %v621_v41  ;;  %v671_v17 = vsel %vm655_vm4, %v654_v40, %v639_v28  ;;  %v638_v50 = vsel %vm622_vm1, %v621_v41, %v606_v15 }
 0x176   : > { %2014 = vrot.lane.b32.xlu1 %v2013_v52, %s2078_s30  ;;  %2009 = vrot.lane.b32.xlu0 %v2008_v55, %s2079_s7  ;;  %v2063_v52 = vpack.i.bf16 %v671_v17, %v656_v49  ;;  %v2058_v53 = vpack.i.bf16 %v638_v50, %v623_v47  ;;  %vm1298_vm1 = vcmask 1044484   ;;  %vm1300_vm3 = vcmask 1045509  }
 0x177   : > { %vm1302_vm4 = vcmask 1046534  }
 0x17a   : > { %2024 = vrot.lane.b32.xlu1 %v2023_v2, %s2079_s7  ;;  %2019 = vrot.lane.b32.xlu0 %v2018_v5, %s2080_s8 }
 0x17e   : > { %2034 = vrot.lane.b32.xlu1 %v2033_v22, %s2080_s8  ;;  %2029 = vrot.lane.b32.xlu0 %v2028_v23, %s2078_s30 }
 0x182   : > { %2044 = vrot.lane.b32.xlu1 %v2043_v34, %s2078_s30  ;;  %2039 = vrot.lane.b32.xlu0 %v2038_v35, %s2079_s7 }
 0x186   : > { %2054 = vrot.lane.b32.xlu1 %v2053_v45, %s2079_s7  ;;  %2049 = vrot.lane.b32.xlu0 %v2048_v48, %s2080_s8 }
 0x18a   : > { %2064 = vrot.lane.b32.xlu1 %v2063_v52, %s2080_s8  ;;  %2059 = vrot.lane.b32.xlu0 %v2058_v53, %s2078_s30 }
 0x1d0   : > { %v1955_v54 = vpop.permute.xlu1 %1954  ;;  %v1950_v55 = vpop.permute.xlu0 %1949 }
 0x1d1   : > { %v1952_v57 = vunpack.i.h.bf16 %v1950_v55  ;;  %v1951_v58 = vunpack.i.l.bf16 %v1950_v55  ;;  %v1957_v61 = vunpack.i.h.bf16 %v1955_v54  ;;  %v1956_v62 = vunpack.i.l.bf16 %v1955_v54 }
 0x1d3   : > { %v865_v28 = vsel %vm864_vm5, %v2268_v10, %v1951_v58  ;;  %v866_v15 = vsel %vm864_vm5, %v2260_v7, %v1952_v57 }
 0x1d4   : > { %v1965_v59 = vpop.permute.xlu1 %1964  ;;  %v1960_v0 = vpop.permute.xlu0 %1959  ;;  %v882_v6 = vsel %vm881_vm6, %v865_v28, %v1956_v62  ;;  %v883_v9 = vsel %vm881_vm6, %v866_v15, %v1957_v61 }
 0x1d5   : > { %v1962_v1 = vunpack.i.h.bf16 %v1960_v0  ;;  %v1961_v2 = vunpack.i.l.bf16 %v1960_v0  ;;  %v1967_v3 = vunpack.i.h.bf16 %v1965_v59  ;;  %v1966_v5 = vunpack.i.l.bf16 %v1965_v59 }
 0x1d7   : > { %v899_v14 = vsel %vm898_vm7, %v882_v6, %v1961_v2  ;;  %v900_v8 = vsel %vm898_vm7, %v883_v9, %v1962_v1  ;;  %v867_v23 = vsel %vm864_vm5, %v2283_v18, %v1966_v5  ;;  %v868_v25 = vsel %vm864_vm5, %v2273_v12, %v1967_v3 }
 0x1d8   : > { %v1975_v13 = vpop.permute.xlu1 %1974  ;;  %v1970_v21 = vpop.permute.xlu0 %1969  ;;  %1891 = vmatprep.mubr.f32.mxu1 %v899_v14 }
 0x1d9   : > { %v1977_v10 = vunpack.i.h.bf16 %v1975_v13  ;;  %v1976_v20 = vunpack.i.l.bf16 %v1975_v13  ;;  %v1972_v7 = vunpack.i.h.bf16 %v1970_v21  ;;  %v1971_v22 = vunpack.i.l.bf16 %v1970_v21  ;;  %1892 = vmatmul.mubr.f32.vlgmr.msra.gmra.mxu1 %v900_v8 }
 0x1db   : > { %v884_v30 = vsel %vm881_vm6, %v867_v23, %v1971_v22  ;;  %v885_v31 = vsel %vm881_vm6, %v868_v25, %v1972_v7 }
 0x1dc   : > { %v1985_v26 = vpop.permute.xlu1 %1984  ;;  %v1980_v32 = vpop.permute.xlu0 %1979  ;;  %v901_v27 = vsel %vm898_vm7, %v884_v30, %v1976_v20  ;;  %v902_v34 = vsel %vm898_vm7, %v885_v31, %v1977_v10 }
 0x1dd   : > { %v1982_v36 = vunpack.i.h.bf16 %v1980_v32  ;;  %v1981_v35 = vunpack.i.l.bf16 %v1980_v32  ;;  %1894 = vmatprep.mubr.f32.mxu1 %v901_v27  ;;  %v1987_v37 = vunpack.i.h.bf16 %v1985_v26  ;;  %v1986_v39 = vunpack.i.l.bf16 %v1985_v26 }
 0x1de   : > { %1895 = vmatmul.mubr.f32.gmra.mxu1 %v902_v34 }
 0x1df   : > { %v869_v12 = vsel %vm864_vm5, %v2303_v29, %v1981_v35  ;;  %v870_v40 = vsel %vm864_vm5, %v2292_v24, %v1982_v36 }
 0x1e0   : > { %v1995_v18 = vpop.permute.xlu1 %1994  ;;  %v1990_v42 = vpop.permute.xlu0 %1989  ;;  %v886_v49 = vsel %vm881_vm6, %v869_v12, %v1986_v39  ;;  %v887_v47 = vsel %vm881_vm6, %v870_v40, %v1987_v37 }
 0x1e1   : > { %v1992_v41 = vunpack.i.h.bf16 %v1990_v42  ;;  %v1991_v43 = vunpack.i.l.bf16 %v1990_v42  ;;  %v1997_v45 = vunpack.i.h.bf16 %v1995_v18  ;;  %v1996_v48 = vunpack.i.l.bf16 %v1995_v18 }
 0x1e3   : > { %v903_v50 = vsel %vm898_vm7, %v886_v49, %v1991_v43  ;;  %v904_v52 = vsel %vm898_vm7, %v887_v47, %v1992_v41  ;;  %v871_v57 = vsel %vm864_vm5, %v2327_v44, %v1996_v48  ;;  %v872_v58 = vsel %vm864_vm5, %v2316_v38, %v1997_v45 }
 0x1e4   : > { %v2005_v17 = vpop.permute.xlu1 %2004  ;;  %v2000_v29 = vpop.permute.xlu0 %1999  ;;  %1897 = vmatprep.mubr.f32.mxu1 %v903_v50 }
 0x1e5   : > { %v2007_v53 = vunpack.i.h.bf16 %v2005_v17  ;;  %v2006_v54 = vunpack.i.l.bf16 %v2005_v17  ;;  %v2002_v55 = vunpack.i.h.bf16 %v2000_v29  ;;  %v2001_v24 = vunpack.i.l.bf16 %v2000_v29  ;;  %1898 = vmatmul.mubr.f32.gmra.mxu1 %v904_v52 }
 0x1e7   : > { %v888_v62 = vsel %vm881_vm6, %v871_v57, %v2001_v24  ;;  %v889_v59 = vsel %vm881_vm6, %v872_v58, %v2002_v55 }
 0x1e8   : > { %v2015_v61 = vpop.permute.xlu1 %2014  ;;  %v2010_v28 = vpop.permute.xlu0 %2009  ;;  %v905_v15 = vsel %vm898_vm7, %v888_v62, %v2006_v54  ;;  %v906_v0 = vsel %vm898_vm7, %v889_v59, %v2007_v53 }
 0x1e9   : > { %v2012_v1 = vunpack.i.h.bf16 %v2010_v28  ;;  %v2011_v2 = vunpack.i.l.bf16 %v2010_v28  ;;  %1900 = vmatprep.mubr.f32.mxu1 %v905_v15  ;;  %v2017_v3 = vunpack.i.h.bf16 %v2015_v61  ;;  %v2016_v5 = vunpack.i.l.bf16 %v2015_v61  ;;  %v1283_v15 = vld [vmem:[%s2771_s4 + $0x8] sm:$0xff] }
 0x1ea   : > { %1901 = vmatmul.mubr.f32.gmra.mxu1 %v906_v0  ;;  %1916 = vmatpush3.msra.mxu0 %v1283_v15 }
 0x1eb   : > { %v873_v38 = vsel %vm864_vm5, %v2347_v56, %v2011_v2  ;;  %v874_v6 = vsel %vm864_vm5, %v2338_v51, %v2012_v1  ;;  %1920 = vmatprep.subr.mxu0 %v2077_v16 }
 0x1ec   : > { %v2025_v44 = vpop.permute.xlu1 %2024  ;;  %v2020_v9 = vpop.permute.xlu0 %2019  ;;  %v890_v20 = vsel %vm881_vm6, %v873_v38, %v2016_v5  ;;  %v891_v21 = vsel %vm881_vm6, %v874_v6, %v2017_v3 }
 0x1ed   : > { %v2022_v13 = vunpack.i.h.bf16 %v2020_v9  ;;  %v2021_v14 = vunpack.i.l.bf16 %v2020_v9  ;;  %v2027_v8 = vunpack.i.h.bf16 %v2025_v44  ;;  %v2026_v10 = vunpack.i.l.bf16 %v2025_v44 }
 0x1ef   : > { %v907_v22 = vsel %vm898_vm7, %v890_v20, %v2021_v14  ;;  %v908_v23 = vsel %vm898_vm7, %v891_v21, %v2022_v13  ;;  %v875_v31 = vsel %vm864_vm5, %v2365_v4, %v2026_v10  ;;  %v876_v32 = vsel %vm864_vm5, %v2356_v63, %v2027_v8 }
 0x1f0   : > { %v2035_v7 = vpop.permute.xlu1 %2034  ;;  %v2030_v56 = vpop.permute.xlu0 %2029  ;;  %1903 = vmatprep.mubr.f32.mxu1 %v907_v22 }
 0x1f1   : > { %v2037_v25 = vunpack.i.h.bf16 %v2035_v7  ;;  %v2036_v26 = vunpack.i.l.bf16 %v2035_v7  ;;  %v2032_v30 = vunpack.i.h.bf16 %v2030_v56  ;;  %v2031_v51 = vunpack.i.l.bf16 %v2030_v56  ;;  %1904 = vmatmul.mubr.f32.gmra.mxu1 %v908_v23 }
 0x1f3   : > { %v892_v34 = vsel %vm881_vm6, %v875_v31, %v2031_v51  ;;  %v893_v36 = vsel %vm881_vm6, %v876_v32, %v2032_v30 }
 0x1f4   : > { %v2045_v27 = vpop.permute.xlu1 %2044  ;;  %v2040_v35 = vpop.permute.xlu0 %2039  ;;  %v909_v37 = vsel %vm898_vm7, %v892_v34, %v2036_v26  ;;  %v910_v39 = vsel %vm898_vm7, %v893_v36, %v2037_v25 }
 0x1f5   : > { %v2042_v18 = vunpack.i.h.bf16 %v2040_v35  ;;  %v2041_v12 = vunpack.i.l.bf16 %v2040_v35  ;;  %1906 = vmatprep.mubr.f32.mxu1 %v909_v37  ;;  %v2047_v40 = vunpack.i.h.bf16 %v2045_v27  ;;  %v2046_v42 = vunpack.i.l.bf16 %v2045_v27 }
 0x1f6   : > { %1907 = vmatmul.mubr.f32.gmra.mxu1 %v910_v39 }
 0x1f7   : > { %v877_v63 = vsel %vm864_vm5, %v2389_v33, %v2041_v12  ;;  %v878_v41 = vsel %vm864_vm5, %v2374_v19, %v2042_v18 }
 0x1f8   : > { %v2055_v4 = vpop.permute.xlu1 %2054  ;;  %v2050_v43 = vpop.permute.xlu0 %2049  ;;  %v894_v17 = vsel %vm881_vm6, %v877_v63, %v2046_v42  ;;  %v895_v50 = vsel %vm881_vm6, %v878_v41, %v2047_v40 }
 0x1f9   : > { %v2052_v45 = vunpack.i.h.bf16 %v2050_v43  ;;  %v2051_v48 = vunpack.i.l.bf16 %v2050_v43  ;;  %v2057_v49 = vunpack.i.h.bf16 %v2055_v4  ;;  %v2056_v47 = vunpack.i.l.bf16 %v2055_v4 }
 0x1fb   : > { %v911_v53 = vsel %vm898_vm7, %v894_v17, %v2051_v48  ;;  %v912_v54 = vsel %vm898_vm7, %v895_v50, %v2052_v45  ;;  %v879_v57 = vsel %vm864_vm5, %v2421_v60, %v2056_v47  ;;  %v880_v58 = vsel %vm864_vm5, %v2405_v46, %v2057_v49  ;;  %v2563_v46 = vld [vmem:[%s2770_s3] ss:$0 sm:$0xff] }
 0x1fc   : > { %v2065_v52 = vpop.permute.xlu1 %2064  ;;  %v2060_v33 = vpop.permute.xlu0 %2059  ;;  %1909 = vmatprep.mubr.f32.mxu1 %v911_v53  ;;  %v2566_v60 = vadd.s32 8, %v2271_v11  ;;  %vm1304_vm5 = vcmask 1047559  }
 0x1fd   : > { %v2067_v29 = vunpack.i.h.bf16 %v2065_v52  ;;  %v2066_v55 = vunpack.i.l.bf16 %v2065_v52  ;;  %v2062_v24 = vunpack.i.h.bf16 %v2060_v33  ;;  %v2061_v19 = vunpack.i.l.bf16 %v2060_v33  ;;  %1910 = vmatmul.mubr.f32.gmra.mxu1 %v912_v54 }
 0x1fe   : > { %vm1101_vm9 = vcmp.lt.s32.totalorder %v2566_v60, 15  ;;  %vm1193_vm11 = vcmp.lt.s32.totalorder %v2566_v60, 14  ;;  %vm1468_vm12 = vcmp.lt.s32.totalorder %v2566_v60, 13 }
 0x1ff   : > { %v896_v61 = vsel %vm881_vm6, %v879_v57, %v2061_v19  ;;  %v897_v62 = vsel %vm881_vm6, %v880_v58, %v2062_v24  ;;  %vm1657_vm6 = vcmask 31744  }
 0x200   : > { %v913_v59 = vsel %vm898_vm7, %v896_v61, %v2066_v55  ;;  %v914_v28 = vsel %vm898_vm7, %v897_v62, %v2067_v29 }
 0x201   : > { %1912 = vmatprep.mubr.f32.mxu1 %v913_v59 }
 0x202   : > { %1913 = vmatmul.mubr.f32.gmra.mxu1 %v914_v28 }
 0x299   : > { %v1893_v0 = vpop.f32.mrf.mxu1 }
 0x29a   : > { %v1010_v1 = vadd.f32 %v1893_v0, %v2563_v46 }
 0x29b   : > { %v1004_v2 = vpop.f32.mrf.mxu1 }
 0x29c   : > { %v1084_v3 = vmax.f32 %v1010_v1, 0.0  ;;  %v1005_v5 = vadd.f32 %v2563_v46, %v1004_v2 }
 0x29e   : > { %v1103_v11 = vsel %vm1101_vm9, %v1084_v3, 0.0  ;;  %v1195_v44 = vsel %vm1193_vm11, %v1084_v3, 0.0  ;;  %v1470_v38 = vsel %vm1468_vm12, %v1084_v3, 0.0  ;;  %v1083_v6 = vmax.f32 %v1005_v5, 0.0  ;;  %v1896_v9 = vpop.f32.mrf.mxu1 }
 0x29f   : > { %v1120_v13 = vsel %vm1118_vm10, %v1103_v11, -inf  ;;  %v1212_v14 = vsel %vm1210_vm13, %v1195_v44, -inf  ;;  %v1487_v8 = vsel %vm1485_vm14, %v1470_v38, -inf  ;;  %v1020_v10 = vadd.f32 %v1896_v9, %v2563_v46 }
 0x2a0   : > { %v1119_v20 = vsel %vm1118_vm10, %v1083_v6, -inf  ;;  %v1211_v21 = vsel %vm1210_vm13, %v1083_v6, -inf  ;;  %v1486_v7 = vsel %vm1485_vm14, %v1083_v6, -inf  ;;  %v1014_v22 = vpop.f32.mrf.mxu1 }
 0x2a1   : > { %v1121_v23 = vmax.f32 %v1119_v20, %v1120_v13  ;;  %v1213_v25 = vmax.f32 %v1211_v21, %v1212_v14  ;;  %v1488_v26 = vmax.f32 %v1486_v7, %v1487_v8  ;;  %v1086_v56 = vmax.f32 %v1020_v10, 0.0 }
 0x2a2   : > { %v1015_v30 = vadd.f32 %v2563_v46, %v1014_v22 }
 0x2a3   : > { %v1122_v51 = vrot.slane %v1121_v23, 4  ;;  %v1214_v31 = vrot.slane %v1213_v25, 4  ;;  %v1489_v32 = vrot.slane %v1488_v26, 4  ;;  %v1105_v27 = vsel %vm1101_vm9, %v1086_v56, 0.0 }
 0x2a4   : > { %v1129_v34 = vsel %vm1118_vm10, %v1105_v27, -inf  ;;  %v1197_v36 = vsel %vm1193_vm11, %v1086_v56, 0.0  ;;  %v1472_v35 = vsel %vm1468_vm12, %v1086_v56, 0.0  ;;  %v1085_v37 = vmax.f32 %v1015_v30, 0.0 }
 0x2a5   : > { %v1123_v39 = vmax.f32 %v1121_v23, %v1122_v51  ;;  %v1215_v18 = vmax.f32 %v1213_v25, %v1214_v31  ;;  %v1490_v12 = vmax.f32 %v1488_v26, %v1489_v32  ;;  %v1221_v40 = vsel %vm1210_vm13, %v1197_v36, -inf  ;;  %v1899_v42 = vpop.f32.mrf.mxu1 }
 0x2a6   : > { %v1496_v4 = vsel %vm1485_vm14, %v1472_v35, -inf  ;;  %v1128_v63 = vsel %vm1118_vm10, %v1085_v37, -inf  ;;  %v1220_v41 = vsel %vm1210_vm13, %v1085_v37, -inf  ;;  %v1495_v43 = vsel %vm1485_vm14, %v1085_v37, -inf }
 0x2a7   : > { %v1124_v45 = vrot.slane %v1123_v39, 2  ;;  %v1216_v48 = vrot.slane %v1215_v18, 2  ;;  %v1491_v49 = vrot.slane %v1490_v12, 2  ;;  %v1130_v47 = vmax.f32 %v1128_v63, %v1129_v34  ;;  %v1024_v17 = vpop.f32.mrf.mxu1 }
 0x2a8   : > { %v1222_v50 = vmax.f32 %v1220_v41, %v1221_v40  ;;  %v1497_v52 = vmax.f32 %v1495_v43, %v1496_v4  ;;  %v1030_v53 = vadd.f32 %v1899_v42, %v2563_v46  ;;  %v1025_v54 = vadd.f32 %v2563_v46, %v1024_v17 }
 0x2a9   : > { %v1125_v29 = vmax.f32 %v1123_v39, %v1124_v45  ;;  %v1131_v55 = vrot.slane %v1130_v47, 4  ;;  %v1217_v33 = vmax.f32 %v1215_v18, %v1216_v48  ;;  %v2601_v24 = vmax.f32 %v1490_v12, %v1491_v49 }
 0x2aa   : > { %v1223_v19 = vrot.slane %v1222_v50, 4  ;;  %v1088_v57 = vmax.f32 %v1030_v53, 0.0  ;;  %v1087_v61 = vmax.f32 %v1025_v54, 0.0  ;;  %v1902_v62 = vpop.f32.mrf.mxu1  ;;  %v1498_v28 = vrot.slane %v1497_v52, 4 }
 0x2ab   : > { %v1132_v58 = vmax.f32 %v1130_v47, %v1131_v55  ;;  %v1126_v1 = vrot.slane %v1125_v29, 1  ;;  %v1218_v3 = vrot.slane %v1217_v33, 1  ;;  %v1493_v5 = vrot.slane %v2601_v24, 1 }
 0x2ac   : > { %v1224_v59 = vmax.f32 %v1222_v50, %v1223_v19  ;;  %v1107_v15 = vsel %vm1101_vm9, %v1088_v57, 0.0  ;;  %v1199_v0 = vsel %vm1193_vm11, %v1088_v57, 0.0  ;;  %v1474_v6 = vsel %vm1468_vm12, %v1088_v57, 0.0  ;;  %v1034_v14 = vpop.f32.mrf.mxu1 }
 0x2ad   : > { %v1133_v2 = vrot.slane %v1132_v58, 2  ;;  %v1138_v11 = vsel %vm1118_vm10, %v1107_v15, -inf  ;;  %v1230_v44 = vsel %vm1210_vm13, %v1199_v0, -inf  ;;  %v1137_v9 = vsel %vm1118_vm10, %v1087_v61, -inf }
 0x2ae   : > { %v1229_v13 = vsel %vm1210_vm13, %v1087_v61, -inf  ;;  %v1225_v8 = vrot.slane %v1224_v59, 2  ;;  %v1499_v10 = vmax.f32 %v1497_v52, %v1498_v28  ;;  %v1505_v20 = vsel %vm1485_vm14, %v1474_v6, -inf }
 0x2af   : > { %v1134_v38 = vmax.f32 %v1132_v58, %v1133_v2  ;;  %v1139_v21 = vmax.f32 %v1137_v9, %v1138_v11  ;;  %v1231_v22 = vmax.f32 %v1229_v13, %v1230_v44  ;;  %v1504_v23 = vsel %vm1485_vm14, %v1087_v61, -inf }
 0x2b0   : > { %v1040_v25 = vadd.f32 %v1902_v62, %v2563_v46  ;;  %v1127_v56 = vmax.f32 %v1125_v29, %v1126_v1  ;;  %v2617_v30 = vmax.f32 %v1217_v33, %v1218_v3  ;;  %v1506_v31 = vmax.f32 %v1504_v23, %v1505_v20 }
 0x2b1   : > { %v1135_v7 = vrot.slane %v1134_v38, 1  ;;  %v1905_v26 = vpop.f32.mrf.mxu1  ;;  %v1140_v51 = vrot.slane %v1139_v21, 4  ;;  %v1232_v27 = vrot.slane %v1231_v22, 4  ;;  %v1035_v36 = vadd.f32 %v2563_v46, %v1034_v14 }
 0x2b2   : > { %v1090_v34 = vmax.f32 %v1040_v25, 0.0  ;;  %v2620_v35 = vmax.f32 %v1224_v59, %v1225_v8  ;;  %v1500_v37 = vrot.slane %v1499_v10, 2  ;;  %v1507_v18 = vrot.slane %v1506_v31, 4 }
 0x2b3   : > { %v1136_v32 = vmax.f32 %v1134_v38, %v1135_v7  ;;  %v1141_v39 = vmax.f32 %v1139_v21, %v1140_v51  ;;  %v1233_v40 = vmax.f32 %v1231_v22, %v1232_v27  ;;  %v1044_v63 = vpop.f32.mrf.mxu1  ;;  %v1089_v17 = vmax.f32 %v1035_v36, 0.0 }
 0x2b4   : > { %v1109_v42 = vsel %vm1101_vm9, %v1090_v34, 0.0  ;;  %v1201_v4 = vsel %vm1193_vm11, %v1090_v34, 0.0  ;;  %v1508_v43 = vmax.f32 %v1506_v31, %v1507_v18  ;;  %v1476_v47 = vsel %vm1468_vm12, %v1090_v34, 0.0 }
 0x2b5   : > { %v2623_v12 = vsel %vm1292_vm15, %v1136_v32, %v1127_v56  ;;  %v1142_v41 = vrot.slane %v1141_v39, 2  ;;  %v1147_v45 = vsel %vm1118_vm10, %v1109_v42, -inf  ;;  %v1239_v48 = vsel %vm1210_vm13, %v1201_v4, -inf }
 0x2b6   : > { %v1234_v49 = vrot.slane %v1233_v40, 2  ;;  %v1050_v50 = vadd.f32 %v1905_v26, %v2563_v46  ;;  %v1501_v52 = vmax.f32 %v1499_v10, %v1500_v37  ;;  %v1514_v54 = vsel %vm1485_vm14, %v1476_v47, -inf  ;;  %v1908_v38 = vpop.f32.mrf.mxu1 }
 0x2b7   : > { %v1143_v53 = vmax.f32 %v1141_v39, %v1142_v41  ;;  %v1045_v29 = vadd.f32 %v2563_v46, %v1044_v63  ;;  %v1509_v55 = vrot.slane %v1508_v43, 2  ;;  %v1146_v33 = vsel %vm1118_vm10, %v1089_v17, -inf }
 0x2b8   : > { %v1238_v19 = vsel %vm1210_vm13, %v1089_v17, -inf  ;;  %v1513_v57 = vsel %vm1485_vm14, %v1089_v17, -inf  ;;  %v2640_v58 = vmax.f32 %v2601_v24, %v1493_v5  ;;  %v1235_v61 = vmax.f32 %v1233_v40, %v1234_v49  ;;  %v1054_v51 = vpop.f32.mrf.mxu1 }
 0x2b9   : > { %v1148_v62 = vmax.f32 %v1146_v33, %v1147_v45  ;;  %v1240_v59 = vmax.f32 %v1238_v19, %v1239_v48  ;;  %v1227_v28 = vrot.slane %v2620_v35, 1  ;;  %v1515_v15 = vmax.f32 %v1513_v57, %v1514_v54 }
 0x2ba   : > { %v1092_v0 = vmax.f32 %v1050_v50, 0.0  ;;  %v1091_v1 = vmax.f32 %v1045_v29, 0.0  ;;  %v1502_v2 = vrot.slane %v1501_v52, 1  ;;  %v1144_v3 = vrot.slane %v1143_v53, 1 }
 0x2bb   : > { %v1149_v11 = vrot.slane %v1148_v62, 4  ;;  %v1241_v44 = vrot.slane %v1240_v59, 4  ;;  %v1510_v6 = vmax.f32 %v1508_v43, %v1509_v55  ;;  %v1516_v9 = vrot.slane %v1515_v15, 4 }
 0x2bc   : > { %v1111_v13 = vsel %vm1101_vm9, %v1092_v0, 0.0  ;;  %v1203_v24 = vsel %vm1193_vm11, %v1092_v0, 0.0  ;;  %v1236_v5 = vrot.slane %v1235_v61, 1  ;;  %v1478_v7 = vsel %vm1468_vm12, %v1092_v0, 0.0 }
 0x2bd   : > { %v1150_v14 = vmax.f32 %v1148_v62, %v1149_v11  ;;  %v1242_v8 = vmax.f32 %v1240_v59, %v1241_v44  ;;  %v1156_v10 = vsel %vm1118_vm10, %v1111_v13, -inf  ;;  %v1517_v20 = vmax.f32 %v1515_v15, %v1516_v9  ;;  %v1911_v40 = vpop.f32.mrf.mxu1 }
 0x2be   : > { %v1248_v21 = vsel %vm1210_vm13, %v1203_v24, -inf  ;;  %v1155_v22 = vsel %vm1118_vm10, %v1091_v1, -inf  ;;  %v1523_v26 = vsel %vm1485_vm14, %v1478_v7, -inf  ;;  %v1247_v32 = vsel %vm1210_vm13, %v1091_v1, -inf }
 0x2bf   : > { %v1151_v23 = vrot.slane %v1150_v14, 2  ;;  %v1243_v25 = vrot.slane %v1242_v8, 2  ;;  %v1157_v56 = vmax.f32 %v1155_v22, %v1156_v10  ;;  %v1518_v31 = vrot.slane %v1517_v20, 2  ;;  %v1064_v19 = vpop.f32.mrf.mxu1 }
 0x2c0   : > { %v1522_v27 = vsel %vm1485_vm14, %v1091_v1, -inf  ;;  %v1060_v34 = vadd.f32 %v1908_v38, %v2563_v46  ;;  %v1511_v36 = vrot.slane %v1510_v6, 1  ;;  %v1249_v18 = vmax.f32 %v1247_v32, %v1248_v21 }
 0x2c1   : > { %v1152_v37 = vmax.f32 %v1150_v14, %v1151_v23  ;;  %v1158_v39 = vrot.slane %v1157_v56, 4  ;;  %v1244_v42 = vmax.f32 %v1242_v8, %v1243_v25  ;;  %v1519_v4 = vmax.f32 %v1517_v20, %v1518_v31 }
 0x2c2   : > { %v1524_v63 = vmax.f32 %v1522_v27, %v1523_v26  ;;  %v1094_v41 = vmax.f32 %v1060_v34, 0.0  ;;  %v2657_v43 = vmax.f32 %v2620_v35, %v1227_v28  ;;  %v2659_v45 = vmax.f32 %v1501_v52, %v1502_v2  ;;  %v1914_v25 = vpop.f32.mrf.mxu1 }
 0x2c3   : > { %v1250_v48 = vrot.slane %v1249_v18, 4  ;;  %v1055_v49 = vadd.f32 %v2563_v46, %v1054_v51  ;;  %v1159_v47 = vmax.f32 %v1157_v56, %v1158_v39  ;;  %v2666_v29 = vmax.f32 %v1143_v53, %v1144_v3 }
 0x2c4   : > { %v1525_v17 = vrot.slane %v1524_v63, 4  ;;  %v1113_v50 = vsel %vm1101_vm9, %v1094_v41, 0.0  ;;  %v1205_v54 = vsel %vm1193_vm11, %v1094_v41, 0.0  ;;  %v2668_v55 = vmax.f32 %v1235_v61, %v1236_v5 }
 0x2c5   : > { %v1153_v33 = vrot.slane %v1152_v37, 1  ;;  %v1251_v35 = vmax.f32 %v1249_v18, %v1250_v48  ;;  %v2670_v52 = vmax.f32 %v1510_v6, %v1511_v36  ;;  %v1245_v57 = vrot.slane %v1244_v42, 1  ;;  %v1074_v48 = vpop.f32.mrf.mxu1 }
 0x2c6   : > { %v1520_v62 = vrot.slane %v1519_v4, 1  ;;  %v1526_v59 = vmax.f32 %v1524_v63, %v1525_v17  ;;  %v1165_v28 = vsel %vm1118_vm10, %v1113_v50, -inf  ;;  %v1257_v15 = vsel %vm1210_vm13, %v1205_v54, -inf }
 0x2c7   : > { %v1480_v0 = vsel %vm1468_vm12, %v1094_v41, 0.0  ;;  %v1093_v1 = vmax.f32 %v1055_v49, 0.0  ;;  %v1160_v53 = vrot.slane %v1159_v47, 2  ;;  %v1070_v2 = vadd.f32 %v1911_v40, %v2563_v46 }
 0x2c8   : > { %v1532_v61 = vsel %vm1485_vm14, %v1480_v0, -inf  ;;  %v1065_v3 = vadd.f32 %v2563_v46, %v1064_v19  ;;  %v2679_v11 = vmax.f32 %v1152_v37, %v1153_v33  ;;  %v1252_v44 = vrot.slane %v1251_v35, 2 }
 0x2c9   : > { %v1164_v38 = vsel %vm1118_vm10, %v1093_v1, -inf  ;;  %v1256_v6 = vsel %vm1210_vm13, %v1093_v1, -inf  ;;  %v1527_v9 = vrot.slane %v1526_v59, 2  ;;  %v1531_v5 = vsel %vm1485_vm14, %v1093_v1, -inf }
 0x2ca   : > { %v1166_v13 = vmax.f32 %v1164_v38, %v1165_v28  ;;  %v1258_v24 = vmax.f32 %v1256_v6, %v1257_v15  ;;  %v2684_v14 = vmax.f32 %v1244_v42, %v1245_v57  ;;  %v2686_v8 = vmax.f32 %v1519_v4, %v1520_v62 }
 0x2cb   : > { %v1533_v10 = vmax.f32 %v1531_v5, %v1532_v61  ;;  %v1096_v20 = vmax.f32 %v1070_v2, 0.0  ;;  %v1161_v21 = vmax.f32 %v1159_v47, %v1160_v53  ;;  %v1095_v23 = vmax.f32 %v1065_v3, 0.0 }
 0x2cc   : > { %v1167_v7 = vrot.slane %v1166_v13, 4  ;;  %v1259_v22 = vrot.slane %v1258_v24, 4  ;;  %v1253_v26 = vmax.f32 %v1251_v35, %v1252_v44  ;;  %v1528_v32 = vmax.f32 %v1526_v59, %v1527_v9 }
 0x2cd   : > { %v1534_v56 = vrot.slane %v1533_v10, 4  ;;  %v1115_v51 = vsel %vm1101_vm9, %v1096_v20, 0.0  ;;  %v1207_v31 = vsel %vm1193_vm11, %v1096_v20, 0.0  ;;  %v1482_v18 = vsel %vm1468_vm12, %v1096_v20, 0.0 }
 0x2ce   : > { %v1168_v27 = vmax.f32 %v1166_v13, %v1167_v7  ;;  %v1260_v34 = vmax.f32 %v1258_v24, %v1259_v22  ;;  %v1174_v36 = vsel %vm1118_vm10, %v1115_v51, -inf  ;;  %v1266_v39 = vsel %vm1210_vm13, %v1207_v31, -inf }
 0x2cf   : > { %v1535_v37 = vmax.f32 %v1533_v10, %v1534_v56  ;;  %v1173_v40 = vsel %vm1118_vm10, %v1095_v23, -inf  ;;  %v1541_v63 = vsel %vm1485_vm14, %v1482_v18, -inf  ;;  %v1265_v47 = vsel %vm1210_vm13, %v1095_v23, -inf }
 0x2d0   : > { %v1169_v42 = vrot.slane %v1168_v27, 2  ;;  %v1261_v4 = vrot.slane %v1260_v34, 2  ;;  %v1175_v41 = vmax.f32 %v1173_v40, %v1174_v36  ;;  %v1540_v17 = vsel %vm1485_vm14, %v1095_v23, -inf }
 0x2d1   : > { %v1536_v49 = vrot.slane %v1535_v37, 2  ;;  %v1080_v50 = vadd.f32 %v1914_v25, %v2563_v46  ;;  %v1162_v54 = vrot.slane %v1161_v21, 1  ;;  %v1267_v19 = vmax.f32 %v1265_v47, %v1266_v39 }
 0x2d2   : > { %v1170_v33 = vmax.f32 %v1168_v27, %v1169_v42  ;;  %v1176_v35 = vrot.slane %v1175_v41, 4  ;;  %v1254_v57 = vrot.slane %v1253_v26, 1  ;;  %v1542_v62 = vmax.f32 %v1540_v17, %v1541_v63 }
 0x2d3   : > { %v1098_v59 = vmax.f32 %v1080_v50, 0.0  ;;  %v1075_v28 = vadd.f32 %v2563_v46, %v1074_v48  ;;  %v1529_v15 = vrot.slane %v1528_v32, 1  ;;  %v1537_v0 = vmax.f32 %v1535_v37, %v1536_v49 }
 0x2d4   : > { %v1177_v1 = vmax.f32 %v1175_v41, %v1176_v35  ;;  %v1268_v53 = vrot.slane %v1267_v19, 4  ;;  %v1262_v61 = vmax.f32 %v1260_v34, %v1261_v4  ;;  %v1543_v2 = vrot.slane %v1542_v62, 4 }
 0x2d5   : > { %v1117_v3 = vsel %vm1101_vm9, %v1098_v59, 0.0  ;;  %v1209_v44 = vsel %vm1193_vm11, %v1098_v59, 0.0  ;;  %v1171_v38 = vrot.slane %v1170_v33, 1  ;;  %v1484_v5 = vsel %vm1468_vm12, %v1098_v59, 0.0 }
 0x2d6   : > { %v1178_v6 = vrot.slane %v1177_v1, 2  ;;  %v1269_v9 = vmax.f32 %v1267_v19, %v1268_v53  ;;  %v1183_v13 = vsel %vm1118_vm10, %v1117_v3, -inf  ;;  %v1544_v46 = vmax.f32 %v1542_v62, %v1543_v2 }
 0x2d7   : > { %v1275_v24 = vsel %vm1210_vm13, %v1209_v44, -inf  ;;  %v1097_v10 = vmax.f32 %v1075_v28, 0.0  ;;  %v1538_v20 = vrot.slane %v1537_v0, 1  ;;  %v1550_v23 = vsel %vm1485_vm14, %v1484_v5, -inf }
 0x2d8   : > { %v1179_v7 = vmax.f32 %v1177_v1, %v1178_v6  ;;  %v1270_v22 = vrot.slane %v1269_v9, 2  ;;  %v1545_v25 = vrot.slane %v1544_v46, 2  ;;  %v1163_v27 = vmax.f32 %v1161_v21, %v1162_v54 }
 0x2d9   : > { %v1182_v56 = vsel %vm1118_vm10, %v1097_v10, -inf  ;;  %v1274_v51 = vsel %vm1210_vm13, %v1097_v10, -inf  ;;  %v1549_v31 = vsel %vm1485_vm14, %v1097_v10, -inf  ;;  %v1255_v60 = vmax.f32 %v1253_v26, %v1254_v57 }
 0x2da   : > { %v1184_v34 = vmax.f32 %v1182_v56, %v1183_v13  ;;  %v1276_v36 = vmax.f32 %v1274_v51, %v1275_v24  ;;  %v1551_v37 = vmax.f32 %v1549_v31, %v1550_v23  ;;  %v1530_v39 = vmax.f32 %v1528_v32, %v1529_v15  ;;  %v1558_v23 = vld [vmem:[%s2771_s4 + $0x10] sm:$0xff] }
 0x2db   : > { %v1546_v18 = vmax.f32 %v1544_v46, %v1545_v25  ;;  %v1271_v40 = vmax.f32 %v1269_v9, %v1270_v22  ;;  %v1263_v42 = vrot.slane %v1262_v61, 1  ;;  %v1172_v48 = vmax.f32 %v1170_v33, %v1171_v38 }
 0x2dc   : > { %v1185_v4 = vrot.slane %v1184_v34, 4  ;;  %v1277_v63 = vrot.slane %v1276_v36, 4  ;;  %v1552_v41 = vrot.slane %v1551_v37, 4  ;;  %v1180_v49 = vrot.slane %v1179_v7, 1 }
 0x2dd   : > { %v1539_v47 = vmax.f32 %v1537_v0, %v1538_v20  ;;  %v1567_v21 = vsel %vm1292_vm15, %v2659_v45, %v2640_v58  ;;  %v1547_v32 = vrot.slane %v1546_v18, 1  ;;  %v1272_v19 = vrot.slane %v1271_v40, 1 }
 0x2de   : > { %v1186_v17 = vmax.f32 %v1184_v34, %v1185_v4  ;;  %v1278_v50 = vmax.f32 %v1276_v36, %v1277_v63  ;;  %v1553_v54 = vmax.f32 %v1551_v37, %v1552_v41  ;;  %v1568_v26 = vsel %vm1294_vm0, %v2670_v52, %v1567_v21  ;;  %v1757_v37 = vld [vmem:[%s2772_s5] ss:$0 sm:$0xff] }
 0x2df   : > { %v1569_v35 = vsel %vm1296_vm2, %v2686_v8, %v1568_v26  ;;  %v1293_v33 = vsel %vm1292_vm15, %v2657_v43, %v2617_v30  ;;  %v1264_v28 = vmax.f32 %v1262_v61, %v1263_v42  ;;  %v1389_v8 = vsel %vm1294_vm0, %v2666_v29, %v2623_v12 }
 0x2e0   : > { %v1187_v57 = vrot.slane %v1186_v17, 2  ;;  %v1554_v62 = vrot.slane %v1553_v54, 2  ;;  %v1279_v59 = vrot.slane %v1278_v50, 2  ;;  %v1295_v58 = vsel %vm1294_vm0, %v2668_v55, %v1293_v33 }
 0x2e1   : > { %v1570_v45 = vsel %vm1298_vm1, %v1530_v39, %v1569_v35  ;;  %v1297_v52 = vsel %vm1296_vm2, %v2684_v14, %v1295_v58  ;;  %v1181_v30 = vmax.f32 %v1179_v7, %v1180_v49  ;;  %v1548_v43 = vmax.f32 %v1546_v18, %v1547_v32  ;;  %v1191_v7 = vld [vmem:[%s2771_s4] sm:$0xff] }
 0x2e2   : > { %v1188_v15 = vmax.f32 %v1186_v17, %v1187_v57  ;;  %v1555_v0 = vmax.f32 %v1553_v54, %v1554_v62  ;;  %v1280_v1 = vmax.f32 %v1278_v50, %v1279_v59  ;;  %v1273_v53 = vmax.f32 %v1271_v40, %v1272_v19 }
 0x2e3   : > { %v1299_v2 = vsel %vm1298_vm1, %v1255_v60, %v1297_v52  ;;  %v1390_v55 = vsel %vm1296_vm2, %v2679_v11, %v1389_v8  ;;  %v1571_v38 = vsel %vm1300_vm3, %v1539_v47, %v1570_v45 }
 0x2e4   : > { %v1556_v3 = vrot.slane %v1555_v0, 1  ;;  %v1281_v61 = vrot.slane %v1280_v1, 1  ;;  %v1189_v44 = vrot.slane %v1188_v15, 1  ;;  %v1391_v14 = vsel %vm1298_vm1, %v1163_v27, %v1390_v55 }
 0x2e5   : > { %v1301_v12 = vsel %vm1300_vm3, %v1264_v28, %v1299_v2  ;;  %v1392_v29 = vsel %vm1300_vm3, %v1172_v48, %v1391_v14  ;;  %v1572_v24 = vsel %vm1302_vm4, %v1548_v43, %v1571_v38 }
 0x2e6   : > { %v1557_v6 = vmax.f32 %v1555_v0, %v1556_v3  ;;  %v1282_v9 = vmax.f32 %v1280_v1, %v1281_v61  ;;  %v1190_v13 = vmax.f32 %v1188_v15, %v1189_v44  ;;  %v1393_v46 = vsel %vm1302_vm4, %v1181_v30, %v1392_v29 }
 0x2e7   : > { %v1303_v11 = vsel %vm1302_vm4, %v1273_v53, %v1301_v12 }
 0x2e8   : > { %v1573_v5 = vsel %vm1304_vm5, %v1557_v6, %v1572_v24  ;;  %v1305_v10 = vsel %vm1304_vm5, %v1282_v9, %v1303_v11  ;;  %v1394_v20 = vsel %vm1304_vm5, %v1190_v13, %v1393_v46 }
 0x2e9   : > { %1574 = vrot.lane.b32.xlu1 %v1573_v5, %s2082_s13  ;;  %1306 = vrot.lane.b32.xlu0 %v1305_v10, %s2083_s14 }
 0x35b   : > { %v1307_v22 = vpop.permute.xlu0 %1306  ;;  %v1575_v25 = vpop.permute.xlu1 %1574 }
 0x35c   : > { %1918 = vmatmul.mubr.msk.f32.vlgmr.msra.gmra.mxu0 %vm1118_vm10, %v1307_v22 }
 0x35d   : > { %1921 = vmatpush3.msra.mxu0 %v1191_v7  ;;  %1922 = vmatprep.mubr.msk.f32.mxu0 %vm2081_vm8, %v2077_v16 }
 0x35e   : > { %1925 = vmatprep.subr.mxu0 %v2077_v16 }
 0x360   : > { %1923 = vmatmul.mubr.msk.f32.vlgmr.msra.gmra.mxu0 %vm1118_vm10, %v1394_v20 }
 0x361   : > { %1926 = vmatpush3.msra.mxu0 %v1558_v23  ;;  %1927 = vmatprep.mubr.msk.f32.mxu0 %vm2081_vm8, %v2077_v16 }
 0x364   : > { %1928 = vmatmul.mubr.msk.f32.vlgmr.msra.gmra.mxu0 %vm1118_vm10, %v1575_v25 }
 0x41c   : > { %v1376_v56 = vpop.f32.mrf.mxu0 }
 0x41e   : > { %v1919_v51 = vpop.f32.mrf.mxu0 }
 0x420   : > { %v1463_v31 = vpop.f32.mrf.mxu0 }
 0x421   : > { %v1464_v34 = vadd.f32 %v1463_v31, %v1376_v56 }
 0x422   : > { %v1924_v27 = vpop.f32.mrf.mxu0 }
 0x424   : > { %v1644_v36 = vpop.f32.mrf.mxu0 }
 0x425   : > { %v1648_v60 = vadd.f32 %v1644_v36, %v1464_v34 }
 0x426   : > { %v1929_v16 = vpop.f32.mrf.mxu0 }
 0x427   : > { %v1656_v39 = vadd.f32 %v1757_v37, %v1648_v60 }
 0x429   : > { %1658 = vst.msk [vmem:[%s251_s26] sm:$0xff] %vm1657_vm6, %v1656_v39 }
 0x42a PF: > { %s16_s21 = sadd.s32 1, %s2074_s21  }
 0x42b   : > { %p13_p5 = scmp.ge.s32.totalorder %s16_s21, 4  }
 0x42d   :  { %15 = sbr.rel (!%p13_p5) target bundleno = 1 (0x1), region = 74 }

</bundles_post_ra>
